<compile_context>
chip_gen: v7x
topology: tpu7x:2x2x1
jax: 0.10.0
libtpu: 0.0.40
codegen_flags: <defaults>
</compile_context>

<pallas_src>
import jax
import jax.numpy as jnp
import numpy as np
from jax import lax
from jax.experimental import pallas as pl
from jax.experimental.pallas import tpu as pltpu


# ----------------------------- Pallas kernel -------------------------------

def res_stack_kernel(x_ref, lo_ref, hi_ref, w1c_ref, w1o_ref, b1_ref,
                     w2_ref, b2_ref, wsc_ref, bsc_ref, o_ref, taps_ref):
    # x_ref   : (1, tile_T, C)  bf16  activation tile (channels-last)
    # lo_ref  : (1, 1, d, C)    bf16  d rows just before this tile (reflected at t=0)
    # hi_ref  : (1, 1, d, C)    bf16  d rows just after  this tile (reflected at end)
    # w1c_ref : (C, C)          bf16  k=3 dilated conv, CENTER tap   (C_in, C_out)
    # w1o_ref : (2*C, C)        bf16  k=3 dilated conv, outer taps 0 & 2 stacked on rows
    # w2_ref  : (C, C)          bf16  second 1x1 conv                (C_in, C_out)
    # wsc_ref : (C, C)          bf16  shortcut 1x1 conv              (C_in, C_out)
    # b*_ref  : (1, C)          f32   biases
    # o_ref   : (1, tile_T, C)  bf16  output tile
    # taps_ref: (tile_T, 2*C)   bf16  VMEM scratch: outer-tap fused matmul operand
    tile_t = x_ref.shape[1]
    c = x_ref.shape[2]
    d = lo_ref.shape[2]

    def leaky(v_f32):
        # LeakyReLU(0.2) via mul+max (no cmp/select); f32 math, matches reference.
        return jnp.maximum(v_f32, 0.2 * v_f32)

    xb = x_ref[0]                                               # (tile_T, C) bf16

    # shortcut: 1x1 conv == bf16 matmul over channels, f32 accumulation
    sc = jnp.dot(xb, wsc_ref[...], preferred_element_type=jnp.float32) + bsc_ref[...]

    # LeakyReLU on the tile and on the tiny halos, rounded to bf16 for the MXU
    h = leaky(xb.astype(jnp.float32)).astype(jnp.bfloat16)      # (tile_T, C)
    lo = leaky(lo_ref[0, 0].astype(jnp.float32)).astype(jnp.bfloat16)   # (d, C)
    hi = leaky(hi_ref[0, 0].astype(jnp.float32)).astype(jnp.bfloat16)   # (d, C)

    # Assemble only the OUTER taps (bf16 scratch):
    #   lanes [0:C]   = rows shifted by -d (tap 0), halo rows at the top
    #   lanes [C:2C]  = rows shifted by +d (tap 2), halo rows at the bottom
    taps_ref[0:d, 0:c] = lo
    taps_ref[d:tile_t, 0:c] = h[0:tile_t - d, :]
    taps_ref[0:tile_t - d, c:2 * c] = h[d:tile_t, :]
    taps_ref[tile_t - d:tile_t, c:2 * c] = hi

    # y1 = center-tap matmul (straight from h) + fused outer-tap matmul
    y1 = (jnp.dot(h, w1c_ref[...], preferred_element_type=jnp.float32)
          + jnp.dot(taps_ref[...], w1o_ref[...], preferred_element_type=jnp.float32)
          + b1_ref[...])

    # LeakyReLU -> 1x1 conv (leaky on f32 accumulator, round to bf16 for MXU)
    h2 = leaky(y1).astype(jnp.bfloat16)
    y2 = jnp.dot(h2, w2_ref[...], preferred_element_type=jnp.float32) + b2_ref[...]

    # residual add in f32, single bf16 rounding at the store
    o_ref[0] = (sc + y2).astype(o_ref.dtype)


# ------------------------------- Wrapper ------------------------------------

def weight_norm(v, g):
    """PyTorch weight_norm (dim=0): w = g * v / ||v||, norm over non-output dims."""
    norm = jnp.sqrt(jnp.sum(v * v, axis=tuple(range(1, v.ndim)), keepdims=True))
    return g.reshape((-1,) + (1,) * (v.ndim - 1)) * v / norm


def _pick_tile_t(T, d, C, budget_bytes=24 << 20):
    """Largest multiple of 8 dividing T, > d, fitting a pipeline VMEM budget."""
    per_row = 24 * max(C, 8)          # rough bytes per time-row incl. double buffering
    cap = int(min(T, 4096, max(8, budget_bytes // per_row)))
    best = None
    for cand in range(8, cap + 1, 8):
        if T % cand == 0 and cand > d:
            best = cand
    if best is None:
        return T                       # fall back: single full-length tile
    if best == T and T % 16 == 0 and (T // 2) > d:
        best = T // 2                  # keep >=2 time tiles so v7x's 2 TCs get work
    return best


def _build_halos(x, tile_t, d):
    """Per-tile halo rows (pre-activation), with reflection at the sequence ends.

    x: (B, T, C) bf16 channels-last. Returns (lo, hi): (B, nT, d, C) bf16 each,
    where lo[b, t] = rows [t*tile_t - d, t*tile_t) and hi[b, t] =
    rows [(t+1)*tile_t, (t+1)*tile_t + d), with torch ReflectionPad1d semantics.
    """
    B, T, C = x.shape
    nT = T // tile_t
    lo_parts, hi_parts = [], []
    for t in range(nT):
        s = t * tile_t
        e = s + tile_t
        if s - d >= 0:
            lo = x[:, s - d:s, :]
        else:                                   # left reflection: x[d], ..., x[1]
            lo = x[:, 1:d + 1, :][:, ::-1, :]
        if e + d <= T:
            hi = x[:, e:e + d, :]
        else:                                   # right reflection: x[T-2], ..., x[T-1-d]
            hi = x[:, T - 1 - d:T - 1, :][:, ::-1, :]
        lo_parts.append(lo)
        hi_parts.append(hi)
    lo_arr = jnp.stack(lo_parts, axis=1).astype(jnp.bfloat16)   # (B, nT, d, C)
    hi_arr = jnp.stack(hi_parts, axis=1).astype(jnp.bfloat16)
    return lo_arr, hi_arr


def _prep_weights(params, C):
    """weight_norm reparam (f32) -> bf16 kernel-layout weights, f32 biases."""
    # TODO(synk): hoist this per-layer weight prep out of the per-call path.
    w1 = weight_norm(params["v1"], params["g1"])               # (C_out, C_in, 3)
    w2 = weight_norm(params["v2"], params["g2"])[:, :, 0]      # (C_out, C_in)
    wsc = weight_norm(params["vsc"], params["gsc"])[:, :, 0]   # (C_out, C_in)

    w1c = jnp.transpose(w1[:, :, 1]).astype(jnp.bfloat16)      # (C_in, C_out) center
    w1o = jnp.concatenate([jnp.transpose(w1[:, :, 0]),
                           jnp.transpose(w1[:, :, 2])],
                          axis=0).astype(jnp.bfloat16)         # (2*C_in, C_out)
    w2k = jnp.transpose(w2).astype(jnp.bfloat16)               # (C_in, C_out)
    wsck = jnp.transpose(wsc).astype(jnp.bfloat16)             # (C_in, C_out)

    def bias(b):
        return b.reshape(1, C).astype(jnp.float32)

    return (w1c, w1o, bias(params["b1"]), w2k, bias(params["b2"]),
            wsck, bias(params["bsc"]))


def res_stack_forward(x_ncl, params, dilation=1, tile_t=None):
    """x_ncl: (B, C, T) float32 — same layout as the PyTorch module input."""
    B, C, T = x_ncl.shape
    d = int(dilation)
    assert 0 < d < T, "reflection pad requires dilation < T"

    if tile_t is None:
        tile_t = _pick_tile_t(T, d, C)
    assert T % tile_t == 0, "T must be divisible by tile_t"
    assert d < tile_t, "tile_t must be larger than the dilation"
    assert tile_t % 8 == 0 or tile_t == T, "tile_t must be a multiple of 8 (or == T)"
    nT = T // tile_t

    # TODO(synk): keep the surrounding model channels-last to avoid these transposes.
    x = jnp.transpose(x_ncl, (0, 2, 1)).astype(jnp.bfloat16)    # (B, T, C) bf16

    lo_arr, hi_arr = _build_halos(x, tile_t, d)                 # tiny (B, nT, d, C)
    w1c, w1o, b1, w2, b2, wsc, bsc = _prep_weights(params, C)

    out = pl.pallas_call(
        res_stack_kernel,
        out_shape=jax.ShapeDtypeStruct((B, T, C), jnp.bfloat16),
        grid_spec=pltpu.PrefetchScalarGridSpec(
            num_scalar_prefetch=0,
            grid=(B, nT),
            in_specs=[
                pl.BlockSpec((1, tile_t, C), lambda b, t: (b, t, 0)),    # x tile
                pl.BlockSpec((1, 1, d, C), lambda b, t: (b, t, 0, 0)),   # lo halo
                pl.BlockSpec((1, 1, d, C), lambda b, t: (b, t, 0, 0)),   # hi halo
                pl.BlockSpec((C, C), lambda b, t: (0, 0)),               # w1 center
                pl.BlockSpec((2 * C, C), lambda b, t: (0, 0)),           # w1 outer taps
                pl.BlockSpec((1, C), lambda b, t: (0, 0)),               # b1
                pl.BlockSpec((C, C), lambda b, t: (0, 0)),               # w2
                pl.BlockSpec((1, C), lambda b, t: (0, 0)),               # b2
                pl.BlockSpec((C, C), lambda b, t: (0, 0)),               # wsc
                pl.BlockSpec((1, C), lambda b, t: (0, 0)),               # bsc
            ],
            out_specs=pl.BlockSpec((1, tile_t, C), lambda b, t: (b, t, 0)),
            scratch_shapes=[pltpu.VMEM((tile_t, 2 * C), jnp.bfloat16)],
        ),
        compiler_params=pltpu.CompilerParams(
            dimension_semantics=("parallel", "parallel"),
            vmem_limit_bytes=48 * 1024 * 1024,   # within v7x's 64 MiB physical VMEM
        ),
    )(x, lo_arr, hi_arr, w1c, w1o, b1, w2, b2, wsc, bsc)

    # TODO(synk): downstream consumers should stay channels-last bf16; this
    # transpose + f32 cast only restores the PyTorch (B, C, T) f32 contract.
    return jnp.transpose(out, (0, 2, 1)).astype(jnp.float32)


# ------------------------- Pure-JAX reference -------------------------------

def _q(v):
    """Quantize to bf16 and back — mirrors the kernel's matmul-operand precision."""
    return v.astype(jnp.bfloat16).astype(jnp.float32)


def res_stack_reference(x, params, dilation=1):
    """Reference with lax.conv_general_dilated; operands quantized to bf16 at the
    same points as the Pallas kernel, accumulation in f32 (precision HIGHEST)."""
    def conv1d(inp, w, b, dil):
        y = lax.conv_general_dilated(
            inp, w, window_strides=(1,), padding="VALID",
            rhs_dilation=(dil,),
            dimension_numbers=("NCH", "OIH", "NCH"),
            precision=lax.Precision.HIGHEST)
        return y + b[None, :, None]

    w1 = _q(weight_norm(params["v1"], params["g1"]))
    w2 = _q(weight_norm(params["v2"], params["g2"]))
    wsc = _q(weight_norm(params["vsc"], params["gsc"]))

    xq = _q(x)
    sc = conv1d(xq, wsc, params["bsc"], 1)

    h = _q(jnp.where(xq >= 0, xq, 0.2 * xq))
    hp = jnp.pad(h, ((0, 0), (0, 0), (dilation, dilation)), mode="reflect")
    y1 = conv1d(hp, w1, params["b1"], dilation)
    h2 = _q(jnp.where(y1 >= 0, y1, 0.2 * y1))
    y2 = conv1d(h2, w2, params["b2"], 1)
    return sc + y2


# --------------------------------- Main --------------------------------------

if __name__ == "__main__":
    B, C, T = 2, 4, 32
    dilation = 3
    tile_t = 16     # 2 time tiles -> exercises interior + both reflective halo paths

    key = jax.random.PRNGKey(0)
    keys = jax.random.split(key, 8)

    v1 = jax.random.normal(keys[0], (C, C, 3), jnp.float32) * 0.3
    v2 = jax.random.normal(keys[1], (C, C, 1), jnp.float32) * 0.3
    vsc = jax.random.normal(keys[2], (C, C, 1), jnp.float32) * 0.3
    params = {
        "v1": v1,
        "g1": jnp.sqrt(jnp.sum(v1 * v1, axis=(1, 2))),   # torch default: g = ||v||
        "b1": jax.random.normal(keys[3], (C,), jnp.float32) * 0.1,
        "v2": v2,
        "g2": jnp.sqrt(jnp.sum(v2 * v2, axis=(1, 2))),
        "b2": jax.random.normal(keys[4], (C,), jnp.float32) * 0.1,
        "vsc": vsc,
        "gsc": jnp.sqrt(jnp.sum(vsc * vsc, axis=(1, 2))),
        "bsc": jax.random.normal(keys[5], (C,), jnp.float32) * 0.1,
    }

    x = jax.random.normal(keys[6], (B, C, T), jnp.float32)

    out = jax.block_until_ready(res_stack_forward(x, params, dilation=dilation,
                                                  tile_t=tile_t))
    ref = jax.block_until_ready(res_stack_reference(x, params, dilation=dilation))

    np.testing.assert_allclose(np.asarray(out), np.asarray(ref),
                               rtol=1e-2, atol=1e-2)
    print("KERNEL_OK")
</pallas_src>

<mosaic_0001>
module attributes {stable_mosaic.version = 11 : i64} {
  func.func @res_stack_kernel(%arg0: i32, %arg1: i32, %arg2: memref<1x16x4xbf16, #tpu.memory_space<vmem>>, %arg3: memref<1x1x3x4xbf16, #tpu.memory_space<vmem>>, %arg4: memref<1x1x3x4xbf16, #tpu.memory_space<vmem>>, %arg5: memref<4x4xbf16, #tpu.memory_space<vmem>>, %arg6: memref<8x4xbf16, #tpu.memory_space<vmem>>, %arg7: memref<1x4xf32, #tpu.memory_space<vmem>>, %arg8: memref<4x4xbf16, #tpu.memory_space<vmem>>, %arg9: memref<1x4xf32, #tpu.memory_space<vmem>>, %arg10: memref<4x4xbf16, #tpu.memory_space<vmem>>, %arg11: memref<1x4xf32, #tpu.memory_space<vmem>>, %arg12: memref<1x16x4xbf16, #tpu.memory_space<vmem>>, %arg13: memref<16x8xbf16, #tpu.memory_space<vmem>>) attributes {dimension_semantics = [#tpu.dimension_semantics<parallel>, #tpu.dimension_semantics<parallel>], iteration_bounds = array<i64: 2, 2>, scalar_prefetch = 0 : i64, scratch_operands = 1 : i64, tpu.core_type = #tpu.core_type<tc>, window_params = [{transform_indices = @transform_0, window_bounds = array<i64: 1, 16, 4>}, {transform_indices = @transform_1, window_bounds = array<i64: 1, 1, 3, 4>}, {transform_indices = @transform_2, window_bounds = array<i64: 1, 1, 3, 4>}, {pipeline_mode = #tpu.pipeline_mode<synchronous>, transform_indices = @transform_3, window_bounds = array<i64: 4, 4>}, {pipeline_mode = #tpu.pipeline_mode<synchronous>, transform_indices = @transform_4, window_bounds = array<i64: 8, 4>}, {pipeline_mode = #tpu.pipeline_mode<synchronous>, transform_indices = @transform_5, window_bounds = array<i64: 1, 4>}, {pipeline_mode = #tpu.pipeline_mode<synchronous>, transform_indices = @transform_6, window_bounds = array<i64: 4, 4>}, {pipeline_mode = #tpu.pipeline_mode<synchronous>, transform_indices = @transform_7, window_bounds = array<i64: 1, 4>}, {pipeline_mode = #tpu.pipeline_mode<synchronous>, transform_indices = @transform_8, window_bounds = array<i64: 4, 4>}, {pipeline_mode = #tpu.pipeline_mode<synchronous>, transform_indices = @transform_9, window_bounds = array<i64: 1, 4>}, {transform_indices = @transform_10, window_bounds = array<i64: 1, 16, 4>}]} {
    %c0 = arith.constant 0 : index
    %c0_0 = arith.constant 0 : index
    %c0_1 = arith.constant 0 : index
    %0 = vector.load %arg2[%c0, %c0_0, %c0_1] : memref<1x16x4xbf16, #tpu.memory_space<vmem>>, vector<1x16x4xbf16>
    %1 = vector.shape_cast %0 : vector<1x16x4xbf16> to vector<16x4xbf16>
    %c0_2 = arith.constant 0 : index
    %c0_3 = arith.constant 0 : index
    %2 = vector.load %arg10[%c0_2, %c0_3] : memref<4x4xbf16, #tpu.memory_space<vmem>>, vector<4x4xbf16>
    %cst = arith.constant dense<0.000000e+00> : vector<16x4xf32>
    %3 = tpu.matmul %1, %2, %cst {dimension_numbers = #tpu.dot_dimension_numbers<[1], [0], [0], [1], [0, 0, 1, 1], [], []>} : vector<16x4xbf16>, vector<4x4xbf16>, vector<16x4xf32> -> vector<16x4xf32>
    %c0_4 = arith.constant 0 : index
    %c0_5 = arith.constant 0 : index
    %4 = vector.load %arg11[%c0_4, %c0_5] : memref<1x4xf32, #tpu.memory_space<vmem>>, vector<1x4xf32>
    %5 = vector.broadcast %4 : vector<1x4xf32> to vector<16x4xf32>
    %6 = arith.addf %3, %5 : vector<16x4xf32>
    %7 = arith.extf %1 : vector<16x4xbf16> to vector<16x4xf32>
    %cst_6 = arith.constant 2.000000e-01 : f32
    %8 = vector.broadcast %cst_6 : f32 to vector<16x4xf32>
    %9 = arith.mulf %8, %7 : vector<16x4xf32>
    %10 = arith.maximumf %7, %9 : vector<16x4xf32>
    %11 = arith.truncf %10 : vector<16x4xf32> to vector<16x4xbf16>
    %c0_7 = arith.constant 0 : index
    %c0_8 = arith.constant 0 : index
    %c0_9 = arith.constant 0 : index
    %c0_10 = arith.constant 0 : index
    %12 = vector.load %arg3[%c0_7, %c0_8, %c0_9, %c0_10] : memref<1x1x3x4xbf16, #tpu.memory_space<vmem>>, vector<1x1x3x4xbf16>
    %13 = vector.shape_cast %12 : vector<1x1x3x4xbf16> to vector<3x4xbf16>
    %14 = arith.extf %13 : vector<3x4xbf16> to vector<3x4xf32>
    %cst_11 = arith.constant 2.000000e-01 : f32
    %15 = vector.broadcast %cst_11 : f32 to vector<3x4xf32>
    %16 = arith.mulf %15, %14 : vector<3x4xf32>
    %17 = arith.maximumf %14, %16 : vector<3x4xf32>
    %18 = arith.truncf %17 : vector<3x4xf32> to vector<3x4xbf16>
    %c0_12 = arith.constant 0 : index
    %c0_13 = arith.constant 0 : index
    %c0_14 = arith.constant 0 : index
    %c0_15 = arith.constant 0 : index
    %19 = vector.load %arg4[%c0_12, %c0_13, %c0_14, %c0_15] : memref<1x1x3x4xbf16, #tpu.memory_space<vmem>>, vector<1x1x3x4xbf16>
    %20 = vector.shape_cast %19 : vector<1x1x3x4xbf16> to vector<3x4xbf16>
    %21 = arith.extf %20 : vector<3x4xbf16> to vector<3x4xf32>
    %cst_16 = arith.constant 2.000000e-01 : f32
    %22 = vector.broadcast %cst_16 : f32 to vector<3x4xf32>
    %23 = arith.mulf %22, %21 : vector<3x4xf32>
    %24 = arith.maximumf %21, %23 : vector<3x4xf32>
    %25 = arith.truncf %24 : vector<3x4xf32> to vector<3x4xbf16>
    %c0_17 = arith.constant 0 : index
    %c0_18 = arith.constant 0 : index
    %26 = vector.load %arg13[%c0_17, %c0_18] : memref<16x8xbf16, #tpu.memory_space<vmem>>, vector<3x4xbf16>
    tpu.vector_store %arg13[%c0_17, %c0_18], %18 {strides = array<i32>} : memref<16x8xbf16, #tpu.memory_space<vmem>>, vector<3x4xbf16>,
    %27 = vector.extract_strided_slice %11 {offsets = [0, 0], sizes = [13, 4], strides = [1, 1]} : vector<16x4xbf16> to vector<13x4xbf16>
    %c3 = arith.constant 3 : index
    %c0_19 = arith.constant 0 : index
    %28 = vector.load %arg13[%c3, %c0_19] : memref<16x8xbf16, #tpu.memory_space<vmem>>, vector<13x4xbf16>
    tpu.vector_store %arg13[%c3, %c0_19], %27 {strides = array<i32>} : memref<16x8xbf16, #tpu.memory_space<vmem>>, vector<13x4xbf16>,
    %29 = vector.extract_strided_slice %11 {offsets = [3, 0], sizes = [13, 4], strides = [1, 1]} : vector<16x4xbf16> to vector<13x4xbf16>
    %c0_20 = arith.constant 0 : index
    %c4 = arith.constant 4 : index
    %30 = vector.load %arg13[%c0_20, %c4] : memref<16x8xbf16, #tpu.memory_space<vmem>>, vector<13x4xbf16>
    tpu.vector_store %arg13[%c0_20, %c4], %29 {strides = array<i32>} : memref<16x8xbf16, #tpu.memory_space<vmem>>, vector<13x4xbf16>,
    %c13 = arith.constant 13 : index
    %c4_21 = arith.constant 4 : index
    %31 = vector.load %arg13[%c13, %c4_21] : memref<16x8xbf16, #tpu.memory_space<vmem>>, vector<3x4xbf16>
    tpu.vector_store %arg13[%c13, %c4_21], %25 {strides = array<i32>} : memref<16x8xbf16, #tpu.memory_space<vmem>>, vector<3x4xbf16>,
    %c0_22 = arith.constant 0 : index
    %c0_23 = arith.constant 0 : index
    %32 = vector.load %arg5[%c0_22, %c0_23] : memref<4x4xbf16, #tpu.memory_space<vmem>>, vector<4x4xbf16>
    %cst_24 = arith.constant dense<0.000000e+00> : vector<16x4xf32>
    %33 = tpu.matmul %11, %32, %cst_24 {dimension_numbers = #tpu.dot_dimension_numbers<[1], [0], [0], [1], [0, 0, 1, 1], [], []>} : vector<16x4xbf16>, vector<4x4xbf16>, vector<16x4xf32> -> vector<16x4xf32>
    %c0_25 = arith.constant 0 : index
    %c0_26 = arith.constant 0 : index
    %34 = vector.load %arg13[%c0_25, %c0_26] : memref<16x8xbf16, #tpu.memory_space<vmem>>, vector<16x8xbf16>
    %c0_27 = arith.constant 0 : index
    %c0_28 = arith.constant 0 : index
    %35 = vector.load %arg6[%c0_27, %c0_28] : memref<8x4xbf16, #tpu.memory_space<vmem>>, vector<8x4xbf16>
    %cst_29 = arith.constant dense<0.000000e+00> : vector<16x4xf32>
    %36 = tpu.matmul %34, %35, %cst_29 {dimension_numbers = #tpu.dot_dimension_numbers<[1], [0], [0], [1], [0, 0, 1, 1], [], []>} : vector<16x8xbf16>, vector<8x4xbf16>, vector<16x4xf32> -> vector<16x4xf32>
    %37 = arith.addf %33, %36 : vector<16x4xf32>
    %c0_30 = arith.constant 0 : index
    %c0_31 = arith.constant 0 : index
    %38 = vector.load %arg7[%c0_30, %c0_31] : memref<1x4xf32, #tpu.memory_space<vmem>>, vector<1x4xf32>
    %39 = vector.broadcast %38 : vector<1x4xf32> to vector<16x4xf32>
    %40 = arith.addf %37, %39 : vector<16x4xf32>
    %cst_32 = arith.constant 2.000000e-01 : f32
    %41 = vector.broadcast %cst_32 : f32 to vector<16x4xf32>
    %42 = arith.mulf %41, %40 : vector<16x4xf32>
    %43 = arith.maximumf %40, %42 : vector<16x4xf32>
    %44 = arith.truncf %43 : vector<16x4xf32> to vector<16x4xbf16>
    %c0_33 = arith.constant 0 : index
    %c0_34 = arith.constant 0 : index
    %45 = vector.load %arg8[%c0_33, %c0_34] : memref<4x4xbf16, #tpu.memory_space<vmem>>, vector<4x4xbf16>
    %cst_35 = arith.constant dense<0.000000e+00> : vector<16x4xf32>
    %46 = tpu.matmul %44, %45, %cst_35 {dimension_numbers = #tpu.dot_dimension_numbers<[1], [0], [0], [1], [0, 0, 1, 1], [], []>} : vector<16x4xbf16>, vector<4x4xbf16>, vector<16x4xf32> -> vector<16x4xf32>
    %c0_36 = arith.constant 0 : index
    %c0_37 = arith.constant 0 : index
    %47 = vector.load %arg9[%c0_36, %c0_37] : memref<1x4xf32, #tpu.memory_space<vmem>>, vector<1x4xf32>
    %48 = vector.broadcast %47 : vector<1x4xf32> to vector<16x4xf32>
    %49 = arith.addf %46, %48 : vector<16x4xf32>
    %50 = arith.addf %6, %49 : vector<16x4xf32>
    %51 = arith.truncf %50 : vector<16x4xf32> to vector<16x4xbf16>
    %c0_38 = arith.constant 0 : index
    %c0_39 = arith.constant 0 : index
    %c0_40 = arith.constant 0 : index
    %52 = vector.load %arg12[%c0_38, %c0_39, %c0_40] : memref<1x16x4xbf16, #tpu.memory_space<vmem>>, vector<1x16x4xbf16>
    %53 = vector.shape_cast %52 : vector<1x16x4xbf16> to vector<16x4xbf16>
    %54 = vector.shape_cast %51 : vector<16x4xbf16> to vector<1x16x4xbf16>
    tpu.vector_store %arg12[%c0_38, %c0_39, %c0_40], %54 {strides = array<i32>} : memref<1x16x4xbf16, #tpu.memory_space<vmem>>, vector<1x16x4xbf16>,
    return
  }
  func.func @transform_0(%arg0: i32, %arg1: i32) -> (i32, i32, i32) {
    %c0_i32 = arith.constant 0 : i32
    %c0_i32_0 = arith.constant 0 : i32
    return %arg0, %arg1, %c0_i32 : i32, i32, i32
  }
  func.func @transform_1(%arg0: i32, %arg1: i32) -> (i32, i32, i32, i32) {
    %c0_i32 = arith.constant 0 : i32
    %c0_i32_0 = arith.constant 0 : i32
    %c0_i32_1 = arith.constant 0 : i32
    return %arg0, %arg1, %c0_i32, %c0_i32_0 : i32, i32, i32, i32
  }
  func.func @transform_2(%arg0: i32, %arg1: i32) -> (i32, i32, i32, i32) {
    %c0_i32 = arith.constant 0 : i32
    %c0_i32_0 = arith.constant 0 : i32
    %c0_i32_1 = arith.constant 0 : i32
    return %arg0, %arg1, %c0_i32, %c0_i32_0 : i32, i32, i32, i32
  }
  func.func @transform_3(%arg0: i32, %arg1: i32) -> (i32, i32) {
    %c0_i32 = arith.constant 0 : i32
    %c0_i32_0 = arith.constant 0 : i32
    %c0_i32_1 = arith.constant 0 : i32
    return %c0_i32, %c0_i32_0 : i32, i32
  }
  func.func @transform_4(%arg0: i32, %arg1: i32) -> (i32, i32) {
    %c0_i32 = arith.constant 0 : i32
    %c0_i32_0 = arith.constant 0 : i32
    %c0_i32_1 = arith.constant 0 : i32
    return %c0_i32, %c0_i32_0 : i32, i32
  }
  func.func @transform_5(%arg0: i32, %arg1: i32) -> (i32, i32) {
    %c0_i32 = arith.constant 0 : i32
    %c0_i32_0 = arith.constant 0 : i32
    %c0_i32_1 = arith.constant 0 : i32
    return %c0_i32, %c0_i32_0 : i32, i32
  }
  func.func @transform_6(%arg0: i32, %arg1: i32) -> (i32, i32) {
    %c0_i32 = arith.constant 0 : i32
    %c0_i32_0 = arith.constant 0 : i32
    %c0_i32_1 = arith.constant 0 : i32
    return %c0_i32, %c0_i32_0 : i32, i32
  }
  func.func @transform_7(%arg0: i32, %arg1: i32) -> (i32, i32) {
    %c0_i32 = arith.constant 0 : i32
    %c0_i32_0 = arith.constant 0 : i32
    %c0_i32_1 = arith.constant 0 : i32
    return %c0_i32, %c0_i32_0 : i32, i32
  }
  func.func @transform_8(%arg0: i32, %arg1: i32) -> (i32, i32) {
    %c0_i32 = arith.constant 0 : i32
    %c0_i32_0 = arith.constant 0 : i32
    %c0_i32_1 = arith.constant 0 : i32
    return %c0_i32, %c0_i32_0 : i32, i32
  }
  func.func @transform_9(%arg0: i32, %arg1: i32) -> (i32, i32) {
    %c0_i32 = arith.constant 0 : i32
    %c0_i32_0 = arith.constant 0 : i32
    %c0_i32_1 = arith.constant 0 : i32
    return %c0_i32, %c0_i32_0 : i32, i32
  }
  func.func @transform_10(%arg0: i32, %arg1: i32) -> (i32, i32, i32) {
    %c0_i32 = arith.constant 0 : i32
    %c0_i32_0 = arith.constant 0 : i32
    return %arg0, %arg1, %c0_i32 : i32, i32, i32
  }
}

</mosaic_0001>

<bundles_post_ra>
// kernel: tpu_custom_call.1
= control target key start
LH: loop header
LB: loop body
LE: loop exit
PB: predicated region body
PF: predicated region fallthrough
CT: control target
= control target key end

     0   :  { %s1109_s13 = smov 0   ;;  %s1111_s14 = smov 0   ;;  %s1204_s0 = inlined_call_operand.vmem [shape: bf16[2,32,4], index: 0, kind: input, shape index: {}]   ;;  %s1205_s1 = inlined_call_operand.vmem [shape: bf16[2,2,3,4], index: 1, kind: input, shape index: {}]   ;;  %s1206_s2 = inlined_call_operand.vmem [shape: bf16[2,2,3,4], index: 2, kind: input, shape index: {}]   ;;  %s1207_s3 = inlined_call_operand.vmem [shape: bf16[4,4], index: 3, kind: input, shape index: {}]   ;;  %s1208_s4 = inlined_call_operand.vmem [shape: bf16[8,4], index: 4, kind: input, shape index: {}]   ;;  %s1209_s5 = inlined_call_operand.vmem [shape: f32[1,4], index: 5, kind: input, shape index: {}]   ;;  %s1210_s6 = inlined_call_operand.vmem [shape: bf16[4,4], index: 6, kind: input, shape index: {}]   ;;  %s1211_s7 = inlined_call_operand.vmem [shape: f32[1,4], index: 7, kind: input, shape index: {}]   ;;  %s1212_s8 = inlined_call_operand.vmem [shape: bf16[4,4], index: 8, kind: input, shape index: {}]   ;;  %s1213_s9 = inlined_call_operand.vmem [shape: f32[1,4], index: 9, kind: input, shape index: {}]   ;;  %s1214_s10 = inlined_call_operand.vmem [shape: bf16[2,32,4], index: 10, kind: output, shape index: {}]  }
   0x1   :  { %s1113_s15 = smov 0   ;;  %s1115_s16 = smov 0  }
   0x2   :  { %s1117_s17 = smov 0  }
   0x3 LB: > { %s29_s18 = sadd.s32 1, %s1041_s15  ;;  %s32_s19 = sadd.s32 1, %s1045_s16  ;;  %s1049_s17 = sphi %s1117_s17, %s20_s17   ;;  %s1045_s16 = sphi %s1115_s16, %s1220_s16   ;;  %s1041_s15 = sphi %s1113_s15, %s1219_s15   ;;  %s1037_s14 = sphi %s1111_s14, %s1218_s14   ;;  %s1033_s13 = sphi %s1109_s13, %s1217_s13  }
   0x4   : > { %p30_p0 = scmp.ge.s32.totalorder %s29_s18, 2  ;;  %p903_p1 = scmp.ge.s32.totalorder %s1049_s17, 1 }
   0x5   : > { %p363_p2 = scmp.lt.s32.totalorder %s1049_s17, 5 }
   0x6   : > { %s1222_s18 = smov (%p30_p0, %s29_s18), 0  ;;  %s1224_s19 = smov (!%p30_p0, %s32_s19), %s1045_s16 }
   0x7   : > { %p364_p3 = pnand %p903_p1, %p363_p2  ;;  %p34_p4 = scmp.ge.s32.totalorder %s1224_s19, 2 }
   0x8   : > { %s904_s20 = sshll.u32 (!%p364_p3), %s1033_s13, 1  ;;  %p426_p5 = scmp.lt.s32.totalorder (!%p364_p3), %s1037_s14, 1  ;;  %v1051_v5 = vmov (!%p364_p3), 0.0   ;;  %v464_v6 = vld [vmem:[%s1212_s8] sm:$0x3] (!%p364_p3)  ;;  %vm481_vm0 = vcmask (!%p364_p3), 1041408  }
   0x9   : > { %s1226_s19 = smov (%p34_p4, %s1224_s19), 0  ;;  %367 = sbr.rel (%p364_p3) target bundleno = 612 (0x264), region = 60 }
   0xa   : > { %1215 = sst [smem:[#allocation3_spill]] %s1226_s19  ;;  %p428_p6 = scmp.lt.s32.totalorder (!%p364_p3), %s904_s20, 3  ;;  %936 = vmatprep.subr.bf16.mxu1 (!%p364_p3), %v1051_v5  ;;  %948 = vmatprep.subr.bf16.mxu0 (!%p364_p3), %v1051_v5  ;;  %v483_v11 = vsel (!%p364_p3), %vm481_vm0, %v464_v6, 0  ;;  %vm1052_vm1 = vmmov (!%p364_p3), 0   ;;  %vm477_vm2 = vcmask (!%p364_p3), 31744   ;;  %vm543_vm3 = vcmask (!%p364_p3), 25600  }
   0xb   : > { %p437_p7 = scmp.lt.s32.totalorder (!%p364_p3), %s1033_s13, 1  ;;  %938 = vmatprep.mubr.msk.bf16.mxu1 (!%p364_p3), %vm1052_vm1, %v1051_v5  ;;  %950 = vmatprep.mubr.msk.bf16.mxu0 (!%p364_p3), %vm1052_vm1, %v1051_v5  ;;  %vm544_vm4 = vsmask.f32 (!%p364_p3), 1280  ;;  %v546_v23 = vld [vmem:[#allocation2] sm:$0x3] (!%p364_p3)  ;;  %vm600_vm6 = vcmask (!%p364_p3), 1043456  }
   0xc   : > { %937 = vmatpush3.bf16.msra.mxu1 (!%p364_p3), %v483_v11  ;;  %vm545_vm5 = vmand (!%p364_p3), %vm543_vm3, %vm544_vm4  ;;  %v595_v26 = vld [vmem:[%s1208_s4] sm:$0xf] (!%p364_p3)  ;;  %vm558_vm7 = vcmask (!%p364_p3), 31745   ;;  %vm559_vm8 = vsmask.f32 (!%p364_p3), 7942  ;;  %vm570_vm10 = vcmask (!%p364_p3), 63520  }
   0xd   : > { %942 = vmatprep.subr.bf16.mxu1 (!%p364_p3), %v1051_v5  ;;  %v593_v27 = vld [vmem:[%s1207_s3] sm:$0x3] (!%p364_p3)  ;;  %v602_v29 = vsel (!%p364_p3), %vm600_vm6, %v595_v26, 0  ;;  %vm560_vm9 = vmand (!%p364_p3), %vm558_vm7, %vm559_vm8  ;;  %vm571_vm11 = vsmask.f32 (!%p364_p3), 6400  ;;  %vm587_vm13 = vcmask (!%p364_p3), 64550  }
   0xe   : > { %v648_v30 = vsel (!%p364_p3), %vm481_vm0, %v593_v27, 0  ;;  %vm572_vm12 = vmand (!%p364_p3), %vm570_vm10, %vm571_vm11  ;;  %vm588_vm14 = vsmask.f32 (!%p364_p3), 7962  ;;  %v705_v57 = vld [vmem:[%s1210_s6] sm:$0x3] (!%p364_p3) }
   0xf   : > { %949 = vmatpush3.bf16.msra.mxu0 (!%p364_p3), %v648_v30  ;;  %vm589_vm15 = vmand (!%p364_p3), %vm587_vm13, %vm588_vm14  ;;  %v717_v58 = vsel (!%p364_p3), %vm481_vm0, %v705_v57, 0  ;;  %v919_v60 = vld [vmem:[%s1209_s5] ss:$0 sm:$0xff] (!%p364_p3)  ;;  %vm770_vm0 = vcmask (!%p364_p3), 27648  }
  0x10   : > { %s1228_s14 = smov (!%p426_p5, %s1037_s14), 1  ;;  %s1230_s20 = smov (!%p428_p6, %s904_s20), 3  ;;  %954 = vmatprep.subr.bf16.mxu0 %v1051_v5  ;;  %v920_v11 = vld [vmem:[%s1211_s7] ss:$0 sm:$0xff] }
  0x11   : > { %s905_s21 = sshll.u32 %s1228_s14, 2  ;;  %s907_s27 = sshll.u32 %s1228_s14, 1 }
  0x12   : > { %s1139_s22 = sadd.s32 %s905_s21, %s1230_s20  ;;  %s1232_s13 = smov (!%p437_p7, %s1033_s13), 1 }
  0x13   : > { %s906_s23 = sshll.u32 %s1139_s22, 2  ;;  %s440_s28 = sadd.s32 %s907_s27, %s1232_s13 }
  0x14   : > { %s433_s26 = scalar_lea.vmem %s1204_s0, %s906_s23  ;;  %s908_s29 = sshll.u32 %s440_s28, 1 }
  0x15   : > { %v462_v0 = vld [vmem:[%s433_s26] sm:$0xff]   ;;  %s442_s12 = scalar_lea.vmem %s1205_s1, %s908_s29  ;;  %s450_s19 = scalar_lea.vmem %s1206_s2, %s908_s29 }
  0x16   : > { %v526_v1 = vunpack.c.l.bf16 %v462_v0  ;;  %v527_v2 = vunpack.c.h.bf16 %v462_v0  ;;  %v533_v9 = vld [vmem:[%s442_s12] sm:$0x3]  ;;  %939 = vmatmul.mubr.msk.bf16.vlgmr.msra.gmra.mrb[0].mxu1 %vm477_vm2, %v462_v0  ;;  %s1053_s27 = smov 4  }
  0x17   : > { %v538_v10 = vld [vmem:[%s450_s19] sm:$0x3]  ;;  %v534_v12 = vunpack.c.l.bf16 %v533_v9  ;;  %944 = vmatprep.mubr.msk.bf16.mxu1 %vm1052_vm1, %v1051_v5  ;;  %943 = vmatpush3.bf16.msra.mxu1 %v602_v29  ;;  %s459_s19 = scalar_lea.vmem %s1214_s10, %s906_s23 }
  0x18   : > { %v528_v3 = vmul.f32 0.2, %v526_v1  ;;  %v529_v4 = vmul.f32 0.2, %v527_v2  ;;  %v539_v13 = vunpack.c.l.bf16 %v538_v10  ;;  %v914_v9 = vld [vmem:[%s1213_s9] ss:$0 sm:$0xff] }
  0x19   : > { %v535_v15 = vmul.f32 0.2, %v534_v12 }
  0x1a   : > { %v530_v7 = vmax.f32 %v526_v1, %v528_v3  ;;  %v531_v8 = vmax.f32 %v527_v2, %v529_v4  ;;  %v540_v16 = vmul.f32 0.2, %v539_v13 }
  0x1b   : > { %v536_v19 = vmax.f32 %v534_v12, %v535_v15 }
  0x1c   : > { %v532_v14 = vpack.c.bf16 %v531_v8, %v530_v7  ;;  %v541_v20 = vmax.f32 %v539_v13, %v540_v16 }
  0x1d   : > { %v537_v24 = vpack.c.bf16 %v536_v19, %v536_v19 }
  0x1e   : > { %v550_v17 = vshrl.u32 %v532_v14, 16  ;;  %v553_v18 = vshll.u32 %v532_v14, 16  ;;  %v542_v25 = vpack.c.bf16 %v541_v20, %v541_v20  ;;  %951 = vmatmul.mubr.msk.bf16.vlgmr.msra.gmra.mrb[0].mxu0 %vm477_vm2, %v532_v14 }
  0x1f   : > { %v547_v33 = vsel %vm545_vm5, %v537_v24, %v546_v23  ;;  %956 = vmatprep.mubr.msk.bf16.mxu0 %vm1052_vm1, %v1051_v5  ;;  %vm596_vm1 = vcmask 64512   ;;  %955 = vmatpush3.bf16.msra.mxu0 %v717_v58 }
  0x20   : > { %v564_v21 = vrot.slane %v550_v17, 1  ;;  %v565_v22 = vrot.slane %v553_v18, 2  ;;  %v577_v31 = vshrl.u32 %v542_v25, 16  ;;  %v580_v32 = vshll.u32 %v542_v25, 16  ;;  %548 = vst [vmem:[#allocation2] sm:$0x3] %v547_v33 }
  0x21   : > { %v555_v34 = vrot.slane %v553_v18, 7  ;;  %v552_v35 = vrot.slane %v550_v17, 6 }
  0x22   : > { %v566_v28 = vor.u32 %v565_v22, %v564_v21  ;;  %v579_v36 = vrot.slane %v577_v31, 1  ;;  %v582_v37 = vrot.slane %v580_v32, 2 }
  0x23   : > { %v556_v39 = vor.u32 %v555_v34, %v552_v35 }
  0x24   : > { %567 = vrot.lane.b32.xlu0 %v566_v28, %s1053_s27  ;;  %v583_v38 = vor.u32 %v582_v37, %v579_v36 }
  0x27   : > { %v561_v40 = vld [vmem:[#allocation2] sm:$0xfe] }
  0x28   : > { %584 = vrot.lane.b32.xlu0 %v583_v38, %s1053_s27  ;;  %v562_v41 = vsel %vm560_vm9, %v556_v39, %v561_v40 }
  0x29   : > { %563 = vst [vmem:[#allocation2] sm:$0xfe] %v562_v41 }
  0x30   : > { %v573_v42 = vld [vmem:[#allocation2] sm:$0x7f] }
  0x96   : > { %v568_v43 = vpop.permute.xlu0 %567 }
  0x97   : > { %v574_v44 = vsel %vm572_vm12, %v568_v43, %v573_v42 }
  0x98   : > { %575 = vst [vmem:[#allocation2] sm:$0x7f] %v574_v44 }
  0x9a   : > { %v585_v45 = vpop.permute.xlu0 %584 }
  0x9f   : > { %v590_v46 = vld [vmem:[#allocation2] sm:$0xc0] }
  0xa0   : > { %v591_v47 = vsel %vm589_vm15, %v585_v45, %v590_v46 }
  0xa1   : > { %592 = vst [vmem:[#allocation2] sm:$0xc0] %v591_v47 }
  0xa8   : > { %v594_v48 = vld [vmem:[#allocation2] sm:$0xff] }
  0xa9   : > { %945 = vmatmul.mubr.msk.bf16.vlgmr.msra.gmra.mrb[4].mxu1 %vm596_vm1, %v594_v48 }
  0xe9   : > { %v519_v49 = vpop.f32.mrb[0].mxu1 }
  0xea   : > { %v940_v50 = vpop.f32.mrb[1].mxu1  ;;  %v520_v10 = vadd.f32 %v914_v9, %v519_v49 }
  0xeb   : > { %v522_v51 = vpop.f32.mrb[2].mxu1 }
  0xec   : > { %v941_v52 = vpop.f32.mrb[3].mxu1  ;;  %v523_v12 = vadd.f32 %v914_v9, %v522_v51  ;;  %v961_v13 = vadd.f32 %v920_v11, %v520_v10 }
  0xee   : > { %v964_v17 = vadd.f32 %v920_v11, %v523_v12 }
  0xf1   : > { %v684_v53 = vpop.f32.mrb[0].mxu0 }
  0xf2   : > { %v952_v54 = vpop.f32.mrb[1].mxu0 }
  0xf3   : > { %v687_v55 = vpop.f32.mrb[2].mxu0 }
  0xf4   : > { %v953_v56 = vpop.f32.mrb[3].mxu0 }
 0x17c   : > { %v638_v59 = vpop.f32.mrb[4].mxu1 }
 0x17d   : > { %v685_v61 = vadd.f32 %v684_v53, %v638_v59  ;;  %v946_v62 = vpop.f32.mrb[5].mxu1 }
 0x17e   : > { %v641_v63 = vpop.f32.mrb[6].mxu1 }
 0x17f   : > { %v698_v0 = vadd.f32 %v919_v60, %v685_v61  ;;  %v688_v1 = vadd.f32 %v687_v55, %v641_v63  ;;  %v947_v2 = vpop.f32.mrb[7].mxu1 }
 0x181   : > { %v700_v3 = vmul.f32 0.2, %v698_v0  ;;  %v699_v4 = vadd.f32 %v919_v60, %v688_v1 }
 0x183   : > { %v701_v5 = vmul.f32 0.2, %v699_v4  ;;  %v702_v6 = vmax.f32 %v698_v0, %v700_v3 }
 0x185   : > { %v703_v7 = vmax.f32 %v699_v4, %v701_v5 }
 0x187   : > { %v704_v8 = vpack.c.bf16 %v703_v7, %v702_v6 }
 0x189   : > { %957 = vmatmul.mubr.msk.bf16.vlgmr.msra.gmra.mrb[4].mxu0 %vm477_vm2, %v704_v8 }
 0x25c   : > { %v753_v14 = vpop.f32.mrb[4].mxu0 }
 0x25d   : > { %v962_v15 = vadd.f32 %v961_v13, %v753_v14  ;;  %v958_v16 = vpop.f32.mrb[5].mxu0 }
 0x25e   : > { %v756_v18 = vpop.f32.mrb[6].mxu0 }
 0x25f   : > { %v926_v19 = vpack.c.bf16 %v962_v15, %v962_v15  ;;  %v965_v20 = vadd.f32 %v964_v17, %v756_v18  ;;  %v959_v21 = vpop.f32.mrb[7].mxu0 }
 0x261   : > { %771 = vst.msk [vmem:[%s459_s19] sm:$0xf] %vm770_vm0, %v926_v19  ;;  %v927_v22 = vpack.c.bf16 %v965_v20, %v965_v20 }
 0x263   : > { %772 = vst.msk [vmem:[%s459_s19 + $0x4] sm:$0xf] %vm770_vm0, %v927_v22 }
 0x264 PF: > { %s20_s17 = sadd.s32 1, %s1049_s17   ;;  %s1216_s22 = sld [smem:[#allocation3_spill]] }
 0x265   : > { %p17_p8 = scmp.ge.s32.totalorder %s20_s17, 6   ;;  %s1217_s13 = smov %s1041_s15 }
 0x266   : > { %s1218_s14 = smov %s1045_s16  ;;  %s1219_s15 = smov %s1222_s18 }
 0x267   :  { %19 = sbr.rel (!%p17_p8) target bundleno = 3 (0x3), region = 96 }
 0x26a   : > { %s1220_s16 = smov %s1216_s22 }

</bundles_post_ra>
